<compile_context>
chip_gen: v6e
topology: v6e:2x2x1
jax: 0.10.0
libtpu: 0.0.40
codegen_flags: <defaults>
</compile_context>

<pallas_src>
import math
import functools

import jax
import jax.numpy as jnp
from jax import lax
from jax.experimental import pallas as pl
from jax.experimental.pallas import tpu as pltpu


def _memory_unit_kernel(x_ref, mem_t_ref, mem_ref, o_ref, *,
                        inv_tem, shrink_thres, valid_slots):
    """One row-tile of the MemoryUnit forward pass.

    x_ref:     (TILE_N, Z)   input rows (native dtype)
    mem_t_ref: (Z, M_PAD)    memory, transposed, bf16, VMEM-resident
    mem_ref:   (M_PAD, Z)    memory, natural layout, bf16, VMEM-resident
    o_ref:     (TILE_N, Z)   output rows
    """
    x = x_ref[...].astype(jnp.bfloat16)
    mem_t = mem_t_ref[...]
    mem = mem_ref[...]
    m_pad = mem_t.shape[1]

    # logits s = x @ mem.T  -> (TILE_N, M_PAD), f32 accumulation on the MXU.
    s = jnp.dot(x, mem_t, preferred_element_type=jnp.float32)

    # Padded memory slots must receive no probability mass.
    if valid_slots < m_pad:
        col = lax.broadcasted_iota(jnp.int32, s.shape, 1)
        s = jnp.where(col < valid_slots, s, -jnp.inf)

    # softmax(s / tem) folded with hard_shrink_relu + L1 renormalization:
    #   p_i = e_i / S,  keep iff p_i > lambd  <=>  e_i > lambd * S,
    #   renormalized att_i = kept e_i / sum(kept e).
    m = jnp.max(s, axis=-1, keepdims=True)
    e = jnp.exp((s - m) * inv_tem)                 # 1/tem folded into the exponent
    s_sum = jnp.sum(e, axis=-1, keepdims=True)

    if shrink_thres > 0:
        kept = jnp.where(e > shrink_thres * s_sum, e, 0.0)
        denom = jnp.maximum(jnp.sum(kept, axis=-1, keepdims=True), 1e-12)
        att = kept * pl.reciprocal(denom, approx=True)
    else:
        att = e * pl.reciprocal(s_sum, approx=True)

    # out = att @ mem  (padded slots have att == 0 and contribute nothing).
    out = jnp.dot(att.astype(jnp.bfloat16), mem,
                  preferred_element_type=jnp.float32)
    o_ref[...] = out.astype(o_ref.dtype)


def memory_unit_forward(x, mem, *, tem=0.5, shrink_thres=0.005, tile_n=256):
    """Pallas forward pass of MemoryUnit.  x: (N, Z), mem: (M, Z) -> (N, Z)."""
    n, z_dim = x.shape
    mem_dim, z2 = mem.shape
    assert z_dim == z2, "x and mem feature dims must match"

    # Lane-dense memory-slot axis: pad M up to a multiple of 128 (masked to
    # -inf inside the kernel).  mem is tiny, so this is a one-time cheap op.
    m_pad = max(128, ((mem_dim + 127) // 128) * 128)
    mem_bf = mem.astype(jnp.bfloat16)
    if m_pad != mem_dim:
        mem_bf = jnp.pad(mem_bf, ((0, m_pad - mem_dim), (0, 0)))
    mem_t = mem_bf.T  # (Z, M_PAD): hoisted transpose, no in-kernel XLU work.

    # Row tile: multiple of 8 sublanes; the partial last block is handled by
    # Pallas (no N padding -> no extra HBM pass over x).
    tile_rows = min(int(tile_n), ((n + 7) // 8) * 8)
    grid = (pl.cdiv(n, tile_rows),)
    # TODO(synk): on v7x (2 TensorCores) prefer a tile_n giving an even number
    # of grid steps so both cores stay busy.

    kernel = functools.partial(
        _memory_unit_kernel,
        inv_tem=float(1.0 / tem),
        shrink_thres=float(shrink_thres),
        valid_slots=int(mem_dim),
    )

    itemsize = jnp.dtype(x.dtype).itemsize
    cost = pl.CostEstimate(
        flops=2 * 2 * n * m_pad * z_dim,                 # both matmuls
        transcendentals=n * m_pad,                       # exp in softmax
        bytes_accessed=(n * z_dim * itemsize             # x
                        + 2 * m_pad * z_dim * 2          # mem + mem_t (bf16)
                        + n * z_dim * itemsize),         # out
    )

    # Explicit VMEM budgeting (matters on v7x's 64 MiB VMEM / 32 MiB default
    # scoped limit when mem_dim is in the thousands).  Tiny configs keep the
    # compiler default.
    est_vmem = (2 * m_pad * z_dim * 2 * 2                 # mem + mem_t (2 bufs)
                + 2 * tile_rows * z_dim * itemsize * 2    # x / out double-buffers
                + 6 * tile_rows * m_pad * 4)              # f32 elementwise temps
    vmem_limit = None
    if est_vmem > 32 * 1024 * 1024:
        vmem_limit = min(int(est_vmem * 5 // 4), 96 * 1024 * 1024)

    return pl.pallas_call(
        kernel,
        out_shape=jax.ShapeDtypeStruct((n, z_dim), x.dtype),
        grid=grid,
        in_specs=[
            pl.BlockSpec((tile_rows, z_dim), lambda i: (i, 0)),   # x tile
            pl.BlockSpec((z_dim, m_pad), lambda i: (0, 0)),       # mem_t resident
            pl.BlockSpec((m_pad, z_dim), lambda i: (0, 0)),       # mem resident
        ],
        out_specs=pl.BlockSpec((tile_rows, z_dim), lambda i: (i, 0)),
        compiler_params=pltpu.CompilerParams(
            dimension_semantics=("parallel",),
            vmem_limit_bytes=vmem_limit,
        ),
        cost_estimate=cost,
    )(x, mem_t, mem_bf)


def _reference(x, mem, tem=0.5, shrink_thres=0.005):
    """Pure-JAX f32 reference mirroring the PyTorch module exactly."""
    att = jnp.dot(x, mem.T) / tem
    att = jax.nn.softmax(att, axis=1)
    if shrink_thres > 0:
        t = att - shrink_thres
        att = jnp.maximum(t, 0.0) * att / (jnp.abs(t) + 1e-12)
        l1 = jnp.sum(jnp.abs(att), axis=1, keepdims=True)
        att = att / jnp.maximum(l1, 1e-12)
    return jnp.dot(att, mem)


# TODO(synk): update_mem / mem_ptr (ring-buffer memory write) is a stateful
# training-time helper, not part of the forward pass, so it is not translated.

if __name__ == "__main__":
    key = jax.random.PRNGKey(0)
    k_mem, k_x, k_x2 = jax.random.split(key, 3)

    mem_dim, z_dim = 64, 32
    batch = 8

    # reset_parameters(): mem ~ Uniform(-stdv, stdv), stdv = 1/sqrt(z_dim)
    stdv = 1.0 / math.sqrt(z_dim)
    mem = jax.random.uniform(
        k_mem, (mem_dim, z_dim), dtype=jnp.float32, minval=-stdv, maxval=stdv
    )
    x = jax.random.normal(k_x, (batch, z_dim), dtype=jnp.float32)

    out = memory_unit_forward(x, mem, tem=0.5, shrink_thres=0.005)
    out = jax.block_until_ready(out)
    ref = _reference(x, mem, tem=0.5, shrink_thres=0.005)
    assert out.shape == (batch, z_dim)
    # Tolerance accounts for bf16 MXU operands + EUP approx reciprocal.
    assert jnp.allclose(out, ref, atol=1e-2, rtol=1e-2), "mismatch vs reference (small)"

    # Second check exercising the tiled path with a partial last block
    # (N not a multiple of the row tile; no N padding in the wrapper).
    x2 = jax.random.normal(k_x2, (300, z_dim), dtype=jnp.float32)
    out2 = memory_unit_forward(x2, mem, tem=0.5, shrink_thres=0.005, tile_n=128)
    out2 = jax.block_until_ready(out2)
    ref2 = _reference(x2, mem, tem=0.5, shrink_thres=0.005)
    assert out2.shape == (300, z_dim)
    assert jnp.allclose(out2, ref2, atol=1e-2, rtol=1e-2), "mismatch vs reference (tiled)"

    print("KERNEL_OK")
</pallas_src>

<mosaic_0001>
module attributes {stable_mosaic.version = 11 : i64} {
  func.func @_memory_unit_kernel(%arg0: i32, %arg1: memref<8x32xf32, #tpu.memory_space<vmem>>, %arg2: memref<32x128xbf16, #tpu.memory_space<vmem>>, %arg3: memref<128x32xbf16, #tpu.memory_space<vmem>>, %arg4: memref<8x32xf32, #tpu.memory_space<vmem>>) attributes {dimension_semantics = [#tpu.dimension_semantics<parallel>], iteration_bounds = array<i64: 1>, scalar_prefetch = 0 : i64, scratch_operands = 0 : i64, tpu.core_type = #tpu.core_type<tc>, window_params = [{transform_indices = @transform_0, window_bounds = array<i64: 8, 32>}, {pipeline_mode = #tpu.pipeline_mode<synchronous>, transform_indices = @transform_1, window_bounds = array<i64: 32, 128>}, {pipeline_mode = #tpu.pipeline_mode<synchronous>, transform_indices = @transform_2, window_bounds = array<i64: 128, 32>}, {transform_indices = @transform_3, window_bounds = array<i64: 8, 32>}]} {
    %c0 = arith.constant 0 : index
    %c0_0 = arith.constant 0 : index
    %0 = vector.load %arg1[%c0, %c0_0] : memref<8x32xf32, #tpu.memory_space<vmem>>, vector<8x32xf32>
    %1 = arith.truncf %0 : vector<8x32xf32> to vector<8x32xbf16>
    %c0_1 = arith.constant 0 : index
    %c0_2 = arith.constant 0 : index
    %2 = vector.load %arg2[%c0_1, %c0_2] : memref<32x128xbf16, #tpu.memory_space<vmem>>, vector<32x128xbf16>
    %c0_3 = arith.constant 0 : index
    %c0_4 = arith.constant 0 : index
    %3 = vector.load %arg3[%c0_3, %c0_4] : memref<128x32xbf16, #tpu.memory_space<vmem>>, vector<128x32xbf16>
    %cst = arith.constant dense<0.000000e+00> : vector<8x128xf32>
    %4 = tpu.matmul %1, %2, %cst {dimension_numbers = #tpu.dot_dimension_numbers<[1], [0], [0], [1], [0, 0, 1, 1], [], []>} : vector<8x32xbf16>, vector<32x128xbf16>, vector<8x128xf32> -> vector<8x128xf32>
    %5 = tpu.iota {dimensions = array<i32: 1>} : vector<8x128xi32>
    %c64_i32 = arith.constant 64 : i32
    %6 = vector.broadcast %c64_i32 : i32 to vector<8x128xi32>
    %7 = arith.cmpi slt, %5, %6 : vector<8x128xi32>
    %cst_5 = arith.constant 0xFF800000 : f32
    %8 = vector.broadcast %cst_5 : f32 to vector<8x128xf32>
    %9 = arith.select %7, %4, %8 : vector<8x128xi1>, vector<8x128xf32>
    %cst_6 = arith.constant dense<0xFF800000> : vector<8xf32>
    %10 = vector.multi_reduction <maximumf>, %9, %cst_6 [1] : vector<8x128xf32> to vector<8xf32>
    %11 = vector.shape_cast %10 : vector<8xf32> to vector<8x1xf32>
    %12 = vector.broadcast %11 : vector<8x1xf32> to vector<8x128xf32>
    %13 = arith.subf %9, %12 : vector<8x128xf32>
    %cst_7 = arith.constant 2.000000e+00 : f32
    %14 = vector.broadcast %cst_7 : f32 to vector<8x128xf32>
    %15 = arith.mulf %13, %14 : vector<8x128xf32>
    %16 = math.exp %15 : vector<8x128xf32>
    %cst_8 = arith.constant dense<0.000000e+00> : vector<8xf32>
    %17 = vector.multi_reduction <add>, %16, %cst_8 [1] : vector<8x128xf32> to vector<8xf32>
    %18 = vector.shape_cast %17 : vector<8xf32> to vector<8x1xf32>
    %cst_9 = arith.constant 5.000000e-03 : f32
    %19 = vector.broadcast %cst_9 : f32 to vector<8x1xf32>
    %20 = arith.mulf %19, %18 : vector<8x1xf32>
    %21 = vector.broadcast %20 : vector<8x1xf32> to vector<8x128xf32>
    %22 = arith.cmpf ogt, %16, %21 : vector<8x128xf32>
    %cst_10 = arith.constant 0.000000e+00 : f32
    %23 = vector.broadcast %cst_10 : f32 to vector<8x128xf32>
    %24 = arith.select %22, %16, %23 : vector<8x128xi1>, vector<8x128xf32>
    %cst_11 = arith.constant dense<0.000000e+00> : vector<8xf32>
    %25 = vector.multi_reduction <add>, %24, %cst_11 [1] : vector<8x128xf32> to vector<8xf32>
    %26 = vector.shape_cast %25 : vector<8xf32> to vector<8x1xf32>
    %cst_12 = arith.constant 9.99999996E-13 : f32
    %27 = vector.broadcast %cst_12 : f32 to vector<8x1xf32>
    %28 = arith.maximumf %26, %27 : vector<8x1xf32>
    %29 = tpu.reciprocal %28 {approx = true} : vector<8x1xf32> -> vector<8x1xf32>
    %30 = vector.broadcast %29 : vector<8x1xf32> to vector<8x128xf32>
    %31 = arith.mulf %24, %30 : vector<8x128xf32>
    %32 = arith.truncf %31 : vector<8x128xf32> to vector<8x128xbf16>
    %cst_13 = arith.constant dense<0.000000e+00> : vector<8x32xf32>
    %33 = tpu.matmul %32, %3, %cst_13 {dimension_numbers = #tpu.dot_dimension_numbers<[1], [0], [0], [1], [0, 0, 1, 1], [], []>} : vector<8x128xbf16>, vector<128x32xbf16>, vector<8x32xf32> -> vector<8x32xf32>
    %c0_14 = arith.constant 0 : index
    %c0_15 = arith.constant 0 : index
    %34 = vector.load %arg4[%c0_14, %c0_15] : memref<8x32xf32, #tpu.memory_space<vmem>>, vector<8x32xf32>
    tpu.vector_store %arg4[%c0_14, %c0_15], %33 {strides = array<i32>} : memref<8x32xf32, #tpu.memory_space<vmem>>, vector<8x32xf32>,
    return
  }
  func.func @transform_0(%arg0: i32) -> (i32, i32) {
    %c0_i32 = arith.constant 0 : i32
    %c0_i32_0 = arith.constant 0 : i32
    return %arg0, %c0_i32 : i32, i32
  }
  func.func @transform_1(%arg0: i32) -> (i32, i32) {
    %c0_i32 = arith.constant 0 : i32
    %c0_i32_0 = arith.constant 0 : i32
    %c0_i32_1 = arith.constant 0 : i32
    return %c0_i32, %c0_i32_0 : i32, i32
  }
  func.func @transform_2(%arg0: i32) -> (i32, i32) {
    %c0_i32 = arith.constant 0 : i32
    %c0_i32_0 = arith.constant 0 : i32
    %c0_i32_1 = arith.constant 0 : i32
    return %c0_i32, %c0_i32_0 : i32, i32
  }
  func.func @transform_3(%arg0: i32) -> (i32, i32) {
    %c0_i32 = arith.constant 0 : i32
    %c0_i32_0 = arith.constant 0 : i32
    return %arg0, %c0_i32 : i32, i32
  }
}

</mosaic_0001>

<bundles_post_ra>
// kernel: tpu_custom_call.1
= control target key start
LH: loop header
LB: loop body
LE: loop exit
PB: predicated region body
PF: predicated region fallthrough
CT: control target
= control target key end

     0   :  { %v308_v1 = vmov 0.0   ;;  %vm309_vm0 = vmmov 0   ;;  %vm50_vm1 = vcmask 261120   ;;  %s369_s0 = inlined_call_operand.vmem [shape: f32[8,32], index: 0, kind: input, shape index: {}]   ;;  %s370_s1 = inlined_call_operand.vmem [shape: bf16[32,128], index: 1, kind: input, shape index: {}]   ;;  %s371_s2 = inlined_call_operand.vmem [shape: bf16[128,32], index: 2, kind: input, shape index: {}]   ;;  %s372_s3 = inlined_call_operand.hbm [shape: f32[8,32], index: 3, kind: output, shape index: {}]  }
   0x1   :  { %v272_v0 = vld [vmem:[%s370_s1 + $0x8] sm:$0xff]   ;;  %241 = vmatprep.subr.bf16.mxu0 %v308_v1  ;;  %v273_v2 = vld [vmem:[%s370_s1] sm:$0xff]   ;;  %249 = vmatprep.subr.bf16.mxu1 %v308_v1 }
   0x2   :  { %242 = vmatpush3.bf16.msra.mxu0 %v272_v0  ;;  %245 = vmatprep.mubr.msk.bf16.mxu0 %vm309_vm0, %v308_v1  ;;  %v16_v3 = vld [vmem:[%s369_s0] sm:$0xff] }
   0x3   :  { %243 = vmatprep.subr.bf16.mxu0 %v308_v1  ;;  %265 = vmatprep.mubr.msk.bf16.mxu1 %vm309_vm0, %v308_v1  ;;  %v17_v4 = vpack.c.bf16 %v16_v3, %v16_v3 }
   0x6   :  { %244 = vmatpush3.bf16.msra.mxu0 %v273_v2 }
   0x7   :  { %8 = vsyncpa [#allocation3], 0  ;;  %v94_v5 = vlaneseq  ;;  %v274_v17 = vld [vmem:[%s371_s2 + $0x38] sm:$0xff]   ;;  %v275_v18 = vld [vmem:[%s371_s2 + $0x30] sm:$0xff]   ;;  %s310_s5 = smov [#allocation2]  }
   0x8   :  { %250 = vmatpush3.bf16.msra.mxu1 %v274_v17  ;;  %v276_v19 = vld [vmem:[%s371_s2 + $0x28] sm:$0xff]   ;;  %v277_v23 = vld [vmem:[%s371_s2 + $0x20] sm:$0xff]   ;;  %v278_v24 = vld [vmem:[%s371_s2 + $0x18] sm:$0xff]   ;;  %s210_s6 = sshll.u32 %s310_s5, 4  ;;  %s211_s6 = int_to_ptr.vmem [resolvable:$true] %s210_s6 }
   0x9   :  { %246 = vmatmul.mubr.msk.bf16.vlgmr.msra.gmra.mxu0 %vm50_vm1, %v17_v4  ;;  %v95_v6 = vand.u32 127, %v94_v5  ;;  %251 = vmatprep.subr.bf16.mxu1 %v308_v1  ;;  %v279_v25 = vld [vmem:[%s371_s2 + $0x10] sm:$0xff]   ;;  %v280_v26 = vld [vmem:[%s371_s2 + $0x8] sm:$0xff]   ;;  %v281_v27 = vld [vmem:[%s371_s2] sm:$0xff]   ;;  %s286_s7 = scalar_lea.vmem %s211_s6, 128  ;;  %p291_p1 = scmp.lt.s32.totalorder %s211_s6, %s211_s6 }
   0xa   :  { %p287_p0 = scmp.ne.s32.totalorder %s211_s6, %s286_s7  ;;  %p292_p2 = scmp.lt.s32.totalorder %s286_s7, %s286_s7 }
   0xb   :  { %vm96_vm2 = vcmp.lt.s32.totalorder %v95_v6, 64 }
   0xc   :  { %252 = vmatpush3.bf16.msra.mxu1 %v275_v18  ;;  %p293_p3 = por %p292_p2, %p291_p1 }
   0xd   :  { %253 = vmatprep.subr.bf16.mxu1 %v308_v1 }
   0xe   :  { %p294_p4 = pnand %p293_p3, %p287_p0 }
  0x10   :  { %254 = vmatpush3.bf16.msra.mxu1 %v276_v19 }
  0x11   :  { %255 = vmatprep.subr.bf16.mxu1 %v308_v1 }
  0x14   :  { %256 = vmatpush3.bf16.msra.mxu1 %v277_v23 }
  0x15   :  { %257 = vmatprep.subr.bf16.mxu1 %v308_v1 }
  0x18   :  { %258 = vmatpush3.bf16.msra.mxu1 %v278_v24 }
  0x19   :  { %259 = vmatprep.subr.bf16.mxu1 %v308_v1 }
  0x1c   :  { %260 = vmatpush3.bf16.msra.mxu1 %v279_v25 }
  0x1d   :  { %261 = vmatprep.subr.bf16.mxu1 %v308_v1 }
  0x20   :  { %262 = vmatpush3.bf16.msra.mxu1 %v280_v26 }
  0x21   :  { %263 = vmatprep.subr.bf16.mxu1 %v308_v1 }
  0x24   :  { %264 = vmatpush3.bf16.msra.mxu1 %v281_v27 }
  0xc9   :  { %v88_v7 = vpop.f32.mrf.mxu0 }
  0xca   :  { %v97_v8 = vsel %vm96_vm2, %v88_v7, -inf }
  0xcb   :  { %98 = vmax.xlane.f32.xlu0 %v97_v8  ;;  %v247_v9 = vpop.f32.mrf.mxu0 }
  0xcd   :  { %v91_v10 = vpop.f32.mrf.mxu0 }
  0xcf   :  { %v248_v11 = vpop.f32.mrf.mxu0 }
 0x154   :  { %v99_v12 = vpop.xlane.xlu0 %98 }
 0x155   :  { %v100_v13 = vsub.f32 %v97_v8, %v99_v12 }
 0x157   :  { %v101_v14 = vmul.f32 2.0, %v100_v13 }
 0x159   :  { %v102_v15 = vmul.f32 1.442695, %v101_v14 }
 0x15b   :  { %282 = vpow2.f32 %v102_v15 }
 0x168   :  { %v283_v16 = vpop.eup %282 }
 0x169   :  { %104 = vadd.xlane.f32.xlu0 %v283_v16 }
 0x1f2   :  { %v105_v20 = vpop.xlane.xlu0 %104 }
 0x1f3   :  { %v106_v21 = vmul.f32 0.005, %v105_v20 }
 0x1f5   :  { %vm107_vm3 = vcmp.gt.f32.partialorder %v283_v16, %v106_v21 }
 0x1f6   :  { %v108_v22 = vsel %vm107_vm3, %v283_v16, 0.0 }
 0x1f7   :  { %109 = vadd.xlane.f32.xlu1 %v108_v22 }
 0x280   :  { %v110_v28 = vpop.xlane.xlu1 %109 }
 0x281   :  { %v111_v29 = vmax.f32 %v110_v28, 1e-12 }
 0x283   :  { %284 = vrcp.f32 %v111_v29 }
 0x290   :  { %v285_v30 = vpop.eup %284 }
 0x291   :  { %v113_v31 = vmul.f32 %v285_v30, %v108_v22 }
 0x293   :  { %v114_v32 = vpack.c.bf16 %v113_v31, %v113_v31 }
 0x295   :  { %266 = vmatmul.mubr.bf16.vlgmr.msra.gmra.mxu1 %v114_v32 }
 0x355   :  { %v197_v33 = vpop.f32.mrf.mxu1 }
 0x356   :  { %203 = vst.msk [vmem:[#allocation2] sm:$0xff] %vm50_vm1, %v197_v33 }
 0x357   :  { %v267_v34 = vpop.f32.mrf.mxu1 }
 0x358   :  { %297 = shalt.err (!%p294_p4)
}
 0x359   :  { %213 = dma.vmem_to_hbm [thread:$0]  %s211_s6, 128, %s372_s3, [#allocation3]   ;;  %v200_v35 = vpop.f32.mrf.mxu1 }
 0x35b   :  { %v268_v36 = vpop.f32.mrf.mxu1 }
 0x35c   :  { %306 = dma.done.wait [#allocation3], 128  }
 0x35d   :  { %307 = vsyncadd [#allocation3], 4294967168 }
 0x35e   :  { %217 = vsyncpa [#allocation3], 1 }

</bundles_post_ra>
